<compile_context>
chip_gen: v5e
topology: v5e:2x2
jax: 0.10.0
libtpu: 0.0.40
codegen_flags: <defaults>
</compile_context>

<pallas_src>
import functools

import jax
import jax.numpy as jnp
from jax.experimental import pallas as pl
from jax.experimental.pallas import tpu as pltpu


# ---------------------------------------------------------------------------
# helpers
# ---------------------------------------------------------------------------

def _round_up(n, m):
    return (n + m - 1) // m * m


def _pad2d(a, rows, cols):
    r, c = a.shape
    return jnp.pad(a, ((0, rows - r), (0, cols - c)))


def _precise_recip(den):
    """EUP approx reciprocal + 1 Newton-Raphson step (~f32 mantissa)."""
    r = pl.reciprocal(den, approx=True)
    return r * (2.0 - den * r)


# ---------------------------------------------------------------------------
# single-step kernel (two dots; no wrapper-side concat / broadcast copies)
# ---------------------------------------------------------------------------

def ltc_cell_kernel(x_ref, h_ref, t_ref, wi_ref, wh_ref,
                    bias_ref, inv_tau_ref, a_ref, out_ref):
    h = h_ref[...]
    pre = (jnp.dot(x_ref[...], wi_ref[...], preferred_element_type=jnp.float32)
           + jnp.dot(h, wh_ref[...], preferred_element_type=jnp.float32)
           + bias_ref[...])
    f = jnp.tanh(pre)
    t = t_ref[...][:, 0:1]                        # (B_pad, 1): broadcast in-kernel
    num = h + t * f * a_ref[...]
    den = 1.0 + t * (inv_tau_ref[...] + f)        # inv_tau hoisted to wrapper
    out_ref[...] = (num * _precise_recip(den)).astype(out_ref.dtype)


def ltc_cell(x, h, t, w_i, w_h, bias, tau, A):
    """Single LTC step.  x:(B,F) h:(B,H) t:(B,1); params as in init_params."""
    B, F_in = x.shape
    _, H = h.shape
    B_pad = _round_up(B, 8)
    F_pad = _round_up(F_in, 128)
    H_pad = _round_up(H, 128)

    x_p = _pad2d(x, B_pad, F_pad)
    h_p = _pad2d(h, B_pad, H_pad)
    t_p = _pad2d(t, B_pad, 128)            # lane-minimal; broadcast inside kernel
    wi_p = _pad2d(w_i, F_pad, H_pad)
    wh_p = _pad2d(w_h, H_pad, H_pad)
    bias_p = _pad2d(bias.reshape(1, -1), 1, H_pad)
    a_p = _pad2d(A.reshape(1, -1), 1, H_pad)
    # Hoisted: softplus(tau)+eps and its reciprocal are parameter-only.
    inv_tau_p = _pad2d((1.0 / (jax.nn.softplus(tau) + 1e-8)).reshape(1, -1),
                       1, H_pad)

    full = lambda shape: pl.BlockSpec(shape, lambda: (0,) * len(shape))

    out = pl.pallas_call(
        ltc_cell_kernel,
        out_shape=jax.ShapeDtypeStruct((B_pad, H_pad), x.dtype),
        grid=(),
        in_specs=[
            full((B_pad, F_pad)),   # x
            full((B_pad, H_pad)),   # h
            full((B_pad, 128)),     # t (lane-minimal)
            full((F_pad, H_pad)),   # W_i
            full((H_pad, H_pad)),   # W_h
            full((1, H_pad)),       # bias
            full((1, H_pad)),       # 1 / (softplus(tau) + eps)
            full((1, H_pad)),       # A
        ],
        out_specs=full((B_pad, H_pad)),
    )(x_p, h_p, t_p, wi_p, wh_p, bias_p, inv_tau_p, a_p)
    return out[:B, :H]


# ---------------------------------------------------------------------------
# recurrent kernel: TS timesteps per grid step, hidden state in VMEM scratch,
# W_h resident, input projection hoisted out of the serial loop.
# ---------------------------------------------------------------------------

def _ltc_seq_kernel(ts, px_ref, t_ref, h0_ref, wh_ref, inv_tau_ref, a_ref,
                    out_ref, h_state):
    # Re-init the carried hidden state at the first time-block of each batch
    # block (time is the inner, "arbitrary" grid axis).
    @pl.when(pl.program_id(1) == 0)
    def _():
        h_state[...] = h0_ref[...]

    wh = wh_ref[...]
    a_row = a_ref[...]
    inv_tau_row = inv_tau_ref[...]

    def step(s, carry):
        h = h_state[...]
        # pre_x (= x @ W_i + bias) was hoisted; only the recurrent matmul is
        # on the serial critical path.
        pre = px_ref[s] + jnp.dot(h, wh, preferred_element_type=jnp.float32)
        f = jnp.tanh(pre)
        t = t_ref[s][:, 0:1]                      # (B_TILE, 1) lane broadcast
        num = h + t * f * a_row
        den = 1.0 + t * (inv_tau_row + f)
        h_new = num * _precise_recip(den)
        h_state[...] = h_new
        out_ref[s] = h_new.astype(out_ref.dtype)
        return carry

    jax.lax.fori_loop(0, ts, step, 0, unroll=True)


def ltc_sequence(x_seq, h0, t_seq, w_i, w_h, bias, tau, A, *, ts=8):
    """Run the cell over a sequence.  x_seq:(T,B,F) t_seq:(T,B,1) h0:(B,H).
    Returns all hidden states, shape (T, B, H)."""
    T, B, F_in = x_seq.shape
    _, H = h0.shape
    B_pad = _round_up(B, 8)
    H_pad = _round_up(H, 128)
    T_pad = _round_up(T, ts)

    # Batch tiling: gives v7x a parallel grid axis when the batch is large.
    if B_pad > 256:
        b_tile = 256
        B_pad = _round_up(B_pad, b_tile)
    else:
        b_tile = B_pad
    n_b = B_pad // b_tile
    n_t = T_pad // ts

    # Hoisted input projection: one big, well-shaped matmul off the serial
    # critical path (plain XLA).  Padded rows / padded timesteps are zero.
    px = jnp.einsum('tbf,fh->tbh', x_seq, w_i) + bias              # (T, B, H)
    px = jnp.pad(px, ((0, T_pad - T), (0, B_pad - B), (0, H_pad - H)))
    # t padded only to the minimal lane width (t=0 on padded steps/rows makes
    # them exact no-ops: num = h, den = 1).
    t_p = jnp.pad(t_seq, ((0, T_pad - T), (0, B_pad - B), (0, 128 - 1)))

    h0_p = _pad2d(h0, B_pad, H_pad)
    wh_p = _pad2d(w_h, H_pad, H_pad)
    a_p = _pad2d(A.reshape(1, -1), 1, H_pad)
    inv_tau_p = _pad2d((1.0 / (jax.nn.softplus(tau) + 1e-8)).reshape(1, -1),
                       1, H_pad)

    # VMEM budget: resident W_h + double-buffered per-step blocks + scratch.
    est_bytes = 4 * (2 * H_pad * H_pad                 # W_h
                     + 2 * ts * b_tile * (2 * H_pad + 128)  # px, out, t (x2 buf)
                     + 2 * b_tile * H_pad              # h0
                     + 6 * H_pad                       # small param rows
                     + b_tile * H_pad)                 # h_state scratch
    vmem_limit = int(min(48 * 1024 * 1024, max(4 * 1024 * 1024, 2 * est_bytes)))

    const = lambda shape: pl.BlockSpec(shape, lambda b, s: (0,) * len(shape))

    out = pl.pallas_call(
        functools.partial(_ltc_seq_kernel, ts),
        out_shape=jax.ShapeDtypeStruct((T_pad, B_pad, H_pad), x_seq.dtype),
        grid=(n_b, n_t),
        in_specs=[
            pl.BlockSpec((ts, b_tile, H_pad), lambda b, s: (s, b, 0)),  # pre_x
            pl.BlockSpec((ts, b_tile, 128), lambda b, s: (s, b, 0)),    # t
            pl.BlockSpec((b_tile, H_pad), lambda b, s: (b, 0)),         # h0
            const((H_pad, H_pad)),    # W_h (resident; constant index_map)
            const((1, H_pad)),        # 1/(softplus(tau)+eps)
            const((1, H_pad)),        # A
        ],
        out_specs=pl.BlockSpec((ts, b_tile, H_pad), lambda b, s: (s, b, 0)),
        scratch_shapes=[pltpu.VMEM((b_tile, H_pad), jnp.float32)],
        compiler_params=pltpu.CompilerParams(
            dimension_semantics=("parallel", "arbitrary"),
            vmem_limit_bytes=vmem_limit),
    )(px, t_p, h0_p, wh_p, inv_tau_p, a_p)
    return out[:T, :B, :H]


# ---------------------------------------------------------------------------
# params + plain-JAX reference
# ---------------------------------------------------------------------------

def init_params(key, in_features, hidden_features):
    """Deterministic init matching LTCCell.__init__/_init_weights."""
    k1, k2 = jax.random.split(key, 2)

    def xavier_uniform(k, fan_out, fan_in):
        bound = jnp.sqrt(6.0 / (fan_in + fan_out))
        return jax.random.uniform(k, (fan_out, fan_in), jnp.float32,
                                  minval=-bound, maxval=bound)

    # PyTorch Linear weight is (out, in); transpose to (in, out) for x @ W.
    w_i = xavier_uniform(k1, hidden_features, in_features).T      # (F_in, H)
    w_h = xavier_uniform(k2, hidden_features, hidden_features).T  # (H, H)
    bias = jnp.zeros((hidden_features,), jnp.float32)
    tau = jnp.ones((hidden_features,), jnp.float32)
    A = jnp.zeros((hidden_features,), jnp.float32)
    return w_i, w_h, bias, tau, A


def ltc_cell_ref(x, h, t, w_i, w_h, bias, tau, A):
    f = jnp.tanh(x @ w_i + h @ w_h + bias)
    tau_sp = jax.nn.softplus(tau) + 1e-8
    return (h + t * f * A) / (1.0 + t * (1.0 / tau_sp + f))


def ltc_sequence_ref(x_seq, h0, t_seq, w_i, w_h, bias, tau, A):
    def step(h, inp):
        x, t = inp
        h_new = ltc_cell_ref(x, h, t, w_i, w_h, bias, tau, A)
        return h_new, h_new
    _, hs = jax.lax.scan(step, h0, (x_seq, t_seq))
    return hs


# ---------------------------------------------------------------------------

if __name__ == "__main__":
    B, F_IN, H, T = 8, 16, 32, 10
    key = jax.random.PRNGKey(0)
    kx, kh, kt, kp, kxs, kts = jax.random.split(key, 6)

    x = jax.random.normal(kx, (B, F_IN), jnp.float32)
    h = jax.random.normal(kh, (B, H), jnp.float32)
    t = jax.random.uniform(kt, (B, 1), jnp.float32, minval=0.1, maxval=1.0)
    w_i, w_h, bias, tau, A = init_params(kp, F_IN, H)

    # Perturb the zero/one-initialized parameters so every term is exercised
    # (the forward-pass math itself is unchanged).
    ka, kb, ktau = jax.random.split(jax.random.PRNGKey(1), 3)
    A = jax.random.normal(ka, A.shape, jnp.float32) * 0.5
    bias = jax.random.normal(kb, bias.shape, jnp.float32) * 0.1
    tau = 1.0 + jax.random.uniform(ktau, tau.shape, jnp.float32)

    # --- single step ---
    out = jax.block_until_ready(ltc_cell(x, h, t, w_i, w_h, bias, tau, A))
    ref = ltc_cell_ref(x, h, t, w_i, w_h, bias, tau, A)
    assert out.shape == (B, H)
    assert jnp.allclose(out, ref, atol=1e-5, rtol=1e-5), \
        float(jnp.max(jnp.abs(out - ref)))

    # --- recurrent: T not a multiple of ts exercises the time padding ---
    x_seq = jax.random.normal(kxs, (T, B, F_IN), jnp.float32)
    t_seq = jax.random.uniform(kts, (T, B, 1), jnp.float32,
                               minval=0.1, maxval=1.0)
    hs = jax.block_until_ready(
        ltc_sequence(x_seq, h, t_seq, w_i, w_h, bias, tau, A, ts=4))
    hs_ref = ltc_sequence_ref(x_seq, h, t_seq, w_i, w_h, bias, tau, A)
    assert hs.shape == (T, B, H)
    assert jnp.allclose(hs, hs_ref, atol=1e-4, rtol=1e-4), \
        float(jnp.max(jnp.abs(hs - hs_ref)))

    print("KERNEL_OK")
</pallas_src>

<mosaic_0001>
module attributes {stable_mosaic.version = 11 : i64} {
  func.func @ltc_cell_kernel(%arg0: memref<8x128xf32, #tpu.memory_space<vmem>>, %arg1: memref<8x128xf32, #tpu.memory_space<vmem>>, %arg2: memref<8x128xf32, #tpu.memory_space<vmem>>, %arg3: memref<128x128xf32, #tpu.memory_space<vmem>>, %arg4: memref<128x128xf32, #tpu.memory_space<vmem>>, %arg5: memref<1x128xf32, #tpu.memory_space<vmem>>, %arg6: memref<1x128xf32, #tpu.memory_space<vmem>>, %arg7: memref<1x128xf32, #tpu.memory_space<vmem>>, %arg8: memref<8x128xf32, #tpu.memory_space<vmem>>) attributes {dimension_semantics = [], scalar_prefetch = 0 : i64, scratch_operands = 0 : i64, tpu.core_type = #tpu.core_type<tc>} {
    %c0 = arith.constant 0 : index
    %c0_0 = arith.constant 0 : index
    %0 = vector.load %arg1[%c0, %c0_0] : memref<8x128xf32, #tpu.memory_space<vmem>>, vector<8x128xf32>
    %c0_1 = arith.constant 0 : index
    %c0_2 = arith.constant 0 : index
    %1 = vector.load %arg0[%c0_1, %c0_2] : memref<8x128xf32, #tpu.memory_space<vmem>>, vector<8x128xf32>
    %c0_3 = arith.constant 0 : index
    %c0_4 = arith.constant 0 : index
    %2 = vector.load %arg3[%c0_3, %c0_4] : memref<128x128xf32, #tpu.memory_space<vmem>>, vector<128x128xf32>
    %cst = arith.constant dense<0.000000e+00> : vector<8x128xf32>
    %3 = tpu.matmul %1, %2, %cst {dimension_numbers = #tpu.dot_dimension_numbers<[1], [0], [0], [1], [0, 0, 1, 1], [], []>} : vector<8x128xf32>, vector<128x128xf32>, vector<8x128xf32> -> vector<8x128xf32>
    %c0_5 = arith.constant 0 : index
    %c0_6 = arith.constant 0 : index
    %4 = vector.load %arg4[%c0_5, %c0_6] : memref<128x128xf32, #tpu.memory_space<vmem>>, vector<128x128xf32>
    %cst_7 = arith.constant dense<0.000000e+00> : vector<8x128xf32>
    %5 = tpu.matmul %0, %4, %cst_7 {dimension_numbers = #tpu.dot_dimension_numbers<[1], [0], [0], [1], [0, 0, 1, 1], [], []>} : vector<8x128xf32>, vector<128x128xf32>, vector<8x128xf32> -> vector<8x128xf32>
    %6 = arith.addf %3, %5 : vector<8x128xf32>
    %c0_8 = arith.constant 0 : index
    %c0_9 = arith.constant 0 : index
    %7 = vector.load %arg5[%c0_8, %c0_9] : memref<1x128xf32, #tpu.memory_space<vmem>>, vector<1x128xf32>
    %8 = vector.broadcast %7 : vector<1x128xf32> to vector<8x128xf32>
    %9 = arith.addf %6, %8 : vector<8x128xf32>
    %10 = math.tanh %9 : vector<8x128xf32>
    %c0_10 = arith.constant 0 : index
    %c0_11 = arith.constant 0 : index
    %11 = vector.load %arg2[%c0_10, %c0_11] : memref<8x128xf32, #tpu.memory_space<vmem>>, vector<8x128xf32>
    %12 = vector.extract_strided_slice %11 {offsets = [0, 0], sizes = [8, 1], strides = [1, 1]} : vector<8x128xf32> to vector<8x1xf32>
    %13 = vector.broadcast %12 : vector<8x1xf32> to vector<8x128xf32>
    %14 = arith.mulf %13, %10 : vector<8x128xf32>
    %c0_12 = arith.constant 0 : index
    %c0_13 = arith.constant 0 : index
    %15 = vector.load %arg7[%c0_12, %c0_13] : memref<1x128xf32, #tpu.memory_space<vmem>>, vector<1x128xf32>
    %16 = vector.broadcast %15 : vector<1x128xf32> to vector<8x128xf32>
    %17 = arith.mulf %14, %16 : vector<8x128xf32>
    %18 = arith.addf %0, %17 : vector<8x128xf32>
    %c0_14 = arith.constant 0 : index
    %c0_15 = arith.constant 0 : index
    %19 = vector.load %arg6[%c0_14, %c0_15] : memref<1x128xf32, #tpu.memory_space<vmem>>, vector<1x128xf32>
    %20 = vector.broadcast %19 : vector<1x128xf32> to vector<8x128xf32>
    %21 = arith.addf %20, %10 : vector<8x128xf32>
    %22 = vector.broadcast %12 : vector<8x1xf32> to vector<8x128xf32>
    %23 = arith.mulf %22, %21 : vector<8x128xf32>
    %cst_16 = arith.constant 1.000000e+00 : f32
    %24 = vector.broadcast %cst_16 : f32 to vector<8x128xf32>
    %25 = arith.addf %24, %23 : vector<8x128xf32>
    %26 = tpu.reciprocal %25 {approx = true} : vector<8x128xf32> -> vector<8x128xf32>
    %27 = arith.mulf %25, %26 : vector<8x128xf32>
    %cst_17 = arith.constant 2.000000e+00 : f32
    %28 = vector.broadcast %cst_17 : f32 to vector<8x128xf32>
    %29 = arith.subf %28, %27 : vector<8x128xf32>
    %30 = arith.mulf %26, %29 : vector<8x128xf32>
    %31 = arith.mulf %18, %30 : vector<8x128xf32>
    %c0_18 = arith.constant 0 : index
    %c0_19 = arith.constant 0 : index
    %32 = vector.load %arg8[%c0_18, %c0_19] : memref<8x128xf32, #tpu.memory_space<vmem>>, vector<8x128xf32>
    tpu.vector_store %arg8[%c0_18, %c0_19], %31 {strides = array<i32>} : memref<8x128xf32, #tpu.memory_space<vmem>>, vector<8x128xf32>,
    return
  }
}

</mosaic_0001>

<bundles_post_ra>
// kernel: tpu_custom_call.1
= control target key start
LH: loop header
LB: loop body
LE: loop exit
PB: predicated region body
PF: predicated region fallthrough
CT: control target
= control target key end

     0   :  { %13 = vsyncpa [#allocation3], 0  ;;  %s477_s0 = inlined_call_operand.hbm [shape: f32[8,128], index: 0, kind: input, shape index: {}]   ;;  %s478_s1 = inlined_call_operand.hbm [shape: f32[8,128], index: 1, kind: input, shape index: {}]   ;;  %s479_s2 = inlined_call_operand.hbm [shape: f32[8,128], index: 2, kind: input, shape index: {}]   ;;  %s480_s3 = inlined_call_operand.hbm [shape: f32[128,128], index: 3, kind: input, shape index: {}]   ;;  %s481_s4 = inlined_call_operand.hbm [shape: f32[128,128], index: 4, kind: input, shape index: {}]   ;;  %s482_s5 = inlined_call_operand.vmem [shape: f32[1,128], index: 5, kind: input, shape index: {}]   ;;  %s483_s6 = inlined_call_operand.vmem [shape: f32[1,128], index: 6, kind: input, shape index: {}]   ;;  %s484_s7 = inlined_call_operand.vmem [shape: f32[1,128], index: 7, kind: input, shape index: {}]   ;;  %s485_s8 = inlined_call_operand.hbm [shape: f32[8,128], index: 8, kind: output, shape index: {}]  }
   0x1   :  { %14 = vsyncpa [#allocation6], 0 }
   0x2   :  { %15 = vsyncpa [#allocation9], 0  ;;  %s33_s29 = sshll.u32 %s478_s1, 4  ;;  %s34_s29 = int_to_ptr.hbm [resolvable:$true] %s33_s29 }
   0x3   :  { %16 = vsyncpa [#allocation4], 0  ;;  %s396_s30 = smov [#allocation5]   ;;  %s54_s12 = sshll.u32 %s480_s3, 4  ;;  %s55_s12 = int_to_ptr.hbm [resolvable:$true] %s54_s12 }
   0x4   :  { %s35_s9 = sshll.u32 %s396_s30, 4  ;;  %s397_s13 = smov [#allocation8]   ;;  %s36_s9 = int_to_ptr.vmem [resolvable:$true] %s35_s9 }
   0x5   :  { %38 = dma.hbm_to_vmem [thread:$0]  %s34_s29, 128, %s36_s9, [#allocation6]  }
   0x6   :  { %s56_s14 = sshll.u32 %s397_s13, 4  ;;  %s398_s15 = smov 128   ;;  %s57_s14 = int_to_ptr.vmem [resolvable:$true] %s56_s14 }
   0x7   :  { %s399_s16 = smov 8   ;;  %s22_s1 = sshll.u32 %s477_s0, 4  ;;  %s23_s1 = int_to_ptr.hbm [resolvable:$true] %s22_s1 }
   0x8   :  { %62 = dma.hbm_to_vmem [thread:$0]  %s55_s12, 2048, %s57_s14, [#allocation9], %s398_s15, %s398_s15, %s399_s16  }
   0x9   :  { %s400_s19 = smov [#allocation2]   ;;  %s44_s3 = sshll.u32 %s479_s2, 4  ;;  %s45_s3 = int_to_ptr.hbm [resolvable:$true] %s44_s3 }
   0xa   :  { %s24_s20 = sshll.u32 %s400_s19, 4  ;;  %s401_s23 = smov [#allocation7]   ;;  %s25_s20 = int_to_ptr.vmem [resolvable:$true] %s24_s20 }
   0xb   :  { %27 = dma.hbm_to_vmem [thread:$0]  %s23_s1, 128, %s25_s20, [#allocation3]  }
   0xc   :  { %s46_s24 = sshll.u32 %s401_s23, 4  ;;  %s67_s27 = sshll.u32 %s481_s4, 4  ;;  %s47_s24 = int_to_ptr.vmem [resolvable:$true] %s46_s24  ;;  %s68_s27 = int_to_ptr.hbm [resolvable:$true] %s67_s27 }
   0xd   :  { %49 = dma.hbm_to_vmem [thread:$0]  %s45_s3, 128, %s47_s24, [#allocation6]  }
   0xe   :  { %s402_s0 = smov [#allocation10]  }
   0xf   :  { %s69_s28 = sshll.u32 %s402_s0, 4  ;;  %s70_s28 = int_to_ptr.vmem [resolvable:$true] %s69_s28 }
  0x10   :  { %75 = dma.hbm_to_vmem [thread:$0]  %s68_s27, 2048, %s70_s28, [#allocation9], %s398_s15, %s398_s15, %s399_s16  }
  0x11   :  { %388 = dma.done.wait [#allocation3], 128  }
  0x12   :  { %389 = vsyncadd [#allocation3], 4294967168 }
  0x13   :  { %390 = dma.done.wait [#allocation6], 256  }
  0x14   :  { %391 = vsyncadd [#allocation6], 4294967040 }
  0x15   :  { %392 = dma.done.wait [#allocation9], 4096  }
  0x16   :  { %393 = vsyncadd [#allocation9], 4294963200  ;;  %v135_v0 = vld [vmem:[#allocation10 + $0x78] sm:$0xff]  ;;  %v134_v2 = vld [vmem:[#allocation10 + $0x70] sm:$0xff]  ;;  %v403_v6 = vmov 0  }
  0x17   :  { %v119_v1 = vld [vmem:[#allocation8 + $0x78] sm:$0xff]  ;;  %136 = vmatpush.msra.mxu0 %v135_v0  ;;  %v118_v3 = vld [vmem:[#allocation8 + $0x70] sm:$0xff]  ;;  %v133_v4 = vld [vmem:[#allocation10 + $0x68] sm:$0xff]  ;;  %236 = vset.pattern.permute.xlu0 %v403_v6 }
  0x18   :  { %156 = vmatpush.msra.mxu1 %v119_v1  ;;  %v117_v5 = vld [vmem:[#allocation8 + $0x68] sm:$0xff]  ;;  %v132_v7 = vld [vmem:[#allocation10 + $0x60] sm:$0xff]  ;;  %v131_v9 = vld [vmem:[#allocation10 + $0x58] sm:$0xff] }
  0x19   :  { %137 = vmatpush.msra.mxu0 %v134_v2  ;;  %v116_v8 = vld [vmem:[#allocation8 + $0x60] sm:$0xff]  ;;  %v115_v10 = vld [vmem:[#allocation8 + $0x58] sm:$0xff]  ;;  %v130_v11 = vld [vmem:[#allocation10 + $0x50] sm:$0xff] }
  0x1a   :  { %157 = vmatpush.msra.mxu1 %v118_v3  ;;  %v114_v12 = vld [vmem:[#allocation8 + $0x50] sm:$0xff]  ;;  %v129_v13 = vld [vmem:[#allocation10 + $0x48] sm:$0xff]  ;;  %v128_v15 = vld [vmem:[#allocation10 + $0x40] sm:$0xff] }
  0x1b   :  { %138 = vmatpush.msra.mxu0 %v133_v4  ;;  %v113_v14 = vld [vmem:[#allocation8 + $0x48] sm:$0xff]  ;;  %v182_v16 = vld [vmem:[#allocation7] sm:$0xff]  ;;  %v112_v17 = vld [vmem:[#allocation8 + $0x40] sm:$0xff] }
  0x1c   :  { %158 = vmatpush.msra.mxu1 %v117_v5  ;;  %185 = vperm.xlu0 %236, %v182_v16   ;;  %v127_v18 = vld [vmem:[#allocation10 + $0x38] sm:$0xff]  ;;  %v126_v20 = vld [vmem:[#allocation10 + $0x30] sm:$0xff]  ;;  %v125_v22 = vld [vmem:[#allocation10 + $0x28] sm:$0xff] }
  0x1d   :  { %139 = vmatpush.msra.mxu0 %v132_v7  ;;  %v111_v19 = vld [vmem:[#allocation8 + $0x38] sm:$0xff]  ;;  %v110_v21 = vld [vmem:[#allocation8 + $0x30] sm:$0xff]  ;;  %v109_v23 = vld [vmem:[#allocation8 + $0x28] sm:$0xff] }
  0x1e   :  { %159 = vmatpush.msra.mxu1 %v116_v8  ;;  %v124_v24 = vld [vmem:[#allocation10 + $0x20] sm:$0xff]  ;;  %v123_v26 = vld [vmem:[#allocation10 + $0x18] sm:$0xff]  ;;  %v122_v28 = vld [vmem:[#allocation10 + $0x10] sm:$0xff] }
  0x1f   :  { %140 = vmatpush.msra.mxu0 %v131_v9  ;;  %v108_v25 = vld [vmem:[#allocation8 + $0x20] sm:$0xff]  ;;  %v107_v27 = vld [vmem:[#allocation8 + $0x18] sm:$0xff]  ;;  %v106_v29 = vld [vmem:[#allocation8 + $0x10] sm:$0xff] }
  0x20   :  { %160 = vmatpush.msra.mxu1 %v115_v10  ;;  %v121_v30 = vld [vmem:[#allocation10 + $0x8] sm:$0xff]  ;;  %v120_v32 = vld [vmem:[#allocation10] sm:$0xff]  ;;  %v102_v34 = vld [vmem:[#allocation5] sm:$0xff] }
  0x21   :  { %141 = vmatpush.msra.mxu0 %v130_v11  ;;  %v105_v31 = vld [vmem:[#allocation8 + $0x8] sm:$0xff]  ;;  %v104_v33 = vld [vmem:[#allocation8] sm:$0xff] }
  0x22   :  { %161 = vmatpush.msra.mxu1 %v114_v12  ;;  %v103_v35 = vld [vmem:[#allocation2] sm:$0xff] }
  0x23   :  { %142 = vmatpush.msra.mxu0 %v129_v13  ;;  %v237_v36 = vld [vmem:[%s482_s5] ss:$0 sm:$0xff]  ;;  %s404_s5 = smov [#allocation11]  }
  0x24   :  { %162 = vmatpush.msra.mxu1 %v113_v14  ;;  %v239_v41 = vld [vmem:[%s483_s6] ss:$0 sm:$0xff]  ;;  %s213_s11 = sshll.u32 %s404_s5, 4  ;;  %s215_s6 = sshll.u32 %s485_s8, 4  ;;  %s214_s11 = int_to_ptr.vmem [resolvable:$true] %s213_s11  ;;  %s216_s6 = int_to_ptr.hbm [resolvable:$true] %s215_s6 }
  0x25   :  { %143 = vmatpush.msra.mxu0 %v128_v15  ;;  %v238_v47 = vld [vmem:[%s484_s7] ss:$0 sm:$0xff] }
  0x26   :  { %163 = vmatpush.msra.mxu1 %v112_v17 }
  0x27   :  { %144 = vmatpush.msra.mxu0 %v127_v18 }
  0x28   :  { %164 = vmatpush.msra.mxu1 %v111_v19 }
  0x29   :  { %145 = vmatpush.msra.mxu0 %v126_v20 }
  0x2a   :  { %165 = vmatpush.msra.mxu1 %v110_v21 }
  0x2b   :  { %146 = vmatpush.msra.mxu0 %v125_v22 }
  0x2c   :  { %166 = vmatpush.msra.mxu1 %v109_v23 }
  0x2d   :  { %147 = vmatpush.msra.mxu0 %v124_v24 }
  0x2e   :  { %167 = vmatpush.msra.mxu1 %v108_v25 }
  0x2f   :  { %148 = vmatpush.msra.mxu0 %v123_v26 }
  0x30   :  { %168 = vmatpush.msra.mxu1 %v107_v27 }
  0x31   :  { %149 = vmatpush.msra.mxu0 %v122_v28 }
  0x32   :  { %169 = vmatpush.msra.mxu1 %v106_v29 }
  0x33   :  { %150 = vmatpush.msra.mxu0 %v121_v30 }
  0x34   :  { %170 = vmatpush.msra.mxu1 %v105_v31 }
  0x35   :  { %151 = vmatpush.msra.mxu0 %v120_v32 }
  0x36   :  { %171 = vmatpush.msra.mxu1 %v104_v33  ;;  %152 = vmatmul.f32.vlgmr.msra.gmra.mxu0 %v102_v34 }
  0x37   :  { %172 = vmatmul.f32.vlgmr.msra.gmra.mxu1 %v103_v35 }
  0x8e   :  { %v186_v44 = vpop.permute.xlu0 %185 }
  0xb3   :  { %v153_v37 = vpop.f32.mrf.mxu0 }
  0xb4   :  { %v173_v38 = vpop.f32.mrf.mxu1 }
  0xb5   :  { %v174_v39 = vadd.f32 %v173_v38, %v153_v37 }
  0xb7   :  { %v180_v40 = vadd.f32 %v237_v36, %v174_v39 }
  0xb9   :  { %240 = vtanh.f32 %v180_v40 }
  0xbf   :  { %v241_v42 = vpop.eup %240 }
  0xc0   :  { %v199_v43 = vadd.f32 %v241_v42, %v239_v41  ;;  %v188_v48 = vmul.f32 %v241_v42, %v186_v44 }
  0xc2   :  { %v200_v45 = vmul.f32 %v199_v43, %v186_v44  ;;  %v193_v50 = vmul.f32 %v238_v47, %v188_v48 }
  0xc4   :  { %v201_v46 = vadd.f32 1.0, %v200_v45  ;;  %v194_v53 = vadd.f32 %v193_v50, %v102_v34 }
  0xc6   :  { %242 = vrcp.f32 %v201_v46 }
  0xcc   :  { %v243_v49 = vpop.eup %242 }
  0xcd   :  { %v203_v51 = vmul.f32 %v243_v49, %v201_v46 }
  0xcf   :  { %v204_v52 = vsub.f32 2.0, %v203_v51 }
  0xd1   :  { %v205_v54 = vmul.f32 %v243_v49, %v204_v52 }
  0xd3   :  { %v206_v55 = vmul.f32 %v205_v54, %v194_v53 }
  0xd5   :  { %207 = vst [vmem:[#allocation11] sm:$0xff] %v206_v55 }
  0xd6   :  { %218 = dma.vmem_to_hbm [thread:$0]  %s214_s11, 128, %s216_s6, [#allocation4]  }
  0xd7   :  { %394 = dma.done.wait [#allocation4], 128  }
  0xd8   :  { %395 = vsyncadd [#allocation4], 4294967168 }
  0xd9   :  { %223 = vsyncpa [#allocation3], 1 }
  0xda   :  { %224 = vsyncpa [#allocation6], 1 }
  0xdb   :  { %225 = vsyncpa [#allocation9], 1 }
  0xdc   :  { %226 = vsyncpa [#allocation4], 1 }

</bundles_post_ra>
